<compile_context>
chip_gen: v6e
topology: v6e:2x2x1
jax: 0.10.0
libtpu: 0.0.40
codegen_flags: <defaults>
</compile_context>

<pallas_src>
import functools
import math

import jax
import jax.numpy as jnp
from jax.experimental import pallas as pl
from jax.experimental.pallas import tpu as pltpu


# ----------------------------------------------------------------------------
# Kernel
# ----------------------------------------------------------------------------
def _mha_kernel(x_ref, bias_ref, mask_ref, wqkv_ref, bqkv_ref, wo_ref, bo_ref,
                *rest, num_heads, head_dim, weights_mode):
    """One grid step == (one block of Bb batches) x (one head).

    Grid = (B // Bb, H); the head axis is the inner, "arbitrary" axis and the
    (B,T,E) output plus the head-mean weights are output-resident across it.
    """
    if weights_mode == "head":
        out_ref, w_ref, acc_ref = rest
        wacc_ref = None
    elif weights_mode == "mean":
        out_ref, w_ref, acc_ref, wacc_ref = rest
    else:  # "none"
        out_ref, acc_ref = rest
        w_ref = wacc_ref = None

    h = pl.program_id(1)
    nb, tgt, emb = x_ref.shape               # (Bb, T, E) block
    src = bias_ref.shape[-1]                 # S
    dh = head_dim
    cdt = x_ref.dtype                        # compute dtype (bf16 / f32)

    # ---- per-head QKV projection, lane-dense: (Bb*T, E) @ (E, Dh) ----------
    x2 = x_ref[...].reshape(nb * tgt, emb)   # leading-dims merge, layout-free

    def proj(i):                             # -> (Bb, T, Dh) f32
        y = jnp.dot(x2, wqkv_ref[0, i], preferred_element_type=jnp.float32)
        return (y + bqkv_ref[0, i]).reshape(nb, tgt, dh)

    q = proj(0).astype(cdt)                  # scaling already folded into Wq/bq
    k = proj(1).astype(cdt)
    v = proj(2).astype(cdt)

    # ---- scores + softmax (f32) --------------------------------------------
    s = jnp.einsum("btd,bsd->bts", q, k, preferred_element_type=jnp.float32)
    s = s + bias_ref[...].reshape(nb, tgt, src).astype(jnp.float32)
    s = s + mask_ref[...]                    # (Bb,1,S) additive -inf mask
    m = jnp.max(s, axis=-1, keepdims=True)
    e = jnp.exp(s - m)                       # fully-masked row -> NaN (matches PyTorch)
    p = e * pl.reciprocal(jnp.sum(e, axis=-1, keepdims=True), approx=True)

    # ---- attention-weight outputs ------------------------------------------
    if weights_mode == "head":
        w_ref[...] = p.astype(w_ref.dtype).reshape(w_ref.shape)
    elif weights_mode == "mean":
        @pl.when(h == 0)
        def _():
            wacc_ref[...] = jnp.zeros_like(wacc_ref)
        wacc_ref[...] += p * (1.0 / num_heads)

        @pl.when(h == num_heads - 1)
        def _():
            w_ref[...] = wacc_ref[...].astype(w_ref.dtype)

    # ---- context + output projection, accumulated over heads ---------------
    ctx = jnp.einsum("bts,bsd->btd", p.astype(cdt), v,
                     preferred_element_type=jnp.float32)        # (Bb,T,Dh)
    ctx2 = ctx.reshape(nb * tgt, dh).astype(cdt)
    contrib = jnp.dot(ctx2, wo_ref[0],
                      preferred_element_type=jnp.float32)       # (Bb*T, E)

    @pl.when(h == 0)
    def _():
        acc_ref[...] = jnp.broadcast_to(bo_ref[...], acc_ref.shape)  # bias once
    acc_ref[...] += contrib

    @pl.when(h == num_heads - 1)
    def _():
        out_ref[...] = acc_ref[...].reshape(nb, tgt, emb).astype(out_ref.dtype)


# ----------------------------------------------------------------------------
# Wrapper
# ----------------------------------------------------------------------------
def _vmem_limit_bytes():
    """~0.75x physical VMEM (leaves headroom for compiler scratch on v7x)."""
    cap = None
    try:
        cap = getattr(pltpu.get_tpu_info(), "vmem_capacity_bytes", None)
    except Exception:
        cap = None
    if not cap:
        cap = 64 * 2 ** 20                    # conservative v7x assumption
    return int(0.75 * cap)


def _auto_batch_block(batch, tgt_len, src_len):
    """Pack batches per grid step toward Bb*T ~ 128 MXU rows, while keeping
    >= 2 blocks on the parallel batch axis (both v7x TCs busy) and bounding
    the f32 (Bb,T,S) score temporaries to a few MiB."""
    if batch <= 1:
        return 1
    best = 1
    for cand in range(1, batch // 2 + 1):
        if batch % cand:
            continue
        if cand > 1 and cand * tgt_len * src_len * 4 * 8 > (8 << 20):
            break
        best = cand
        if cand * tgt_len >= 128:
            break
    return best


def massformer_mha_forward(query, params, attn_bias, key_padding_mask=None, *,
                           num_heads, need_weights=True, need_head_weights=False,
                           compute_dtype=jnp.bfloat16, out_dtype=None,
                           weights_dtype=None, bias_dtype=None, batch_block=None):
    """query: (tgt_len, bsz, emb) -> (attn (tgt_len, bsz, emb), attn_weights)."""
    T, B, E = query.shape
    S = T
    assert E % num_heads == 0, "embedding_dim must be divisible by num_heads"
    H = num_heads
    Dh = E // H
    scaling = Dh ** (-0.5)

    cdt = jnp.dtype(compute_dtype)
    odt = jnp.dtype(out_dtype) if out_dtype is not None else query.dtype
    wdt = jnp.dtype(weights_dtype) if weights_dtype is not None else cdt
    bdt = jnp.dtype(bias_dtype) if bias_dtype is not None else jnp.float32

    if need_head_weights:
        need_weights = True
    weights_mode = "head" if need_head_weights else ("mean" if need_weights else "none")

    # (T,B,E) -> (B,T,E): leading-dims transpose only (E stays on the lane axis)
    # so every kernel load/store is lane-dense.
    x = jnp.transpose(query, (1, 0, 2)).astype(cdt)

    # Per-head projection weights in (E_in, Dh) orientation (no in-kernel
    # weight transpose); q-scaling folded into Wq / bq.
    def per_head_in(w):                       # (E_out, E_in) -> (H, E_in, Dh)
        return jnp.transpose(w.reshape(H, Dh, E), (0, 2, 1))

    wqkv = jnp.stack([per_head_in(params["wq"] * scaling),
                      per_head_in(params["wk"]),
                      per_head_in(params["wv"])], axis=1).astype(cdt)   # (H,3,E,Dh)
    bqkv = jnp.stack([params["bq"] * scaling, params["bk"], params["bv"]],
                     axis=0).reshape(3, H, Dh)
    bqkv = jnp.transpose(bqkv, (1, 0, 2)).reshape(H, 3, 1, Dh).astype(jnp.float32)
    # Per-head output-projection slices (Dh, E_out): out += ctx_h @ wo_h.
    wo = jnp.transpose(params["wo"]).reshape(H, Dh, E).astype(cdt)       # (H,Dh,E)
    bo = params["bo"].reshape(1, E).astype(jnp.float32)                  # lane-dense

    bias = attn_bias.astype(bdt)                                         # (B,H,T,S)
    if key_padding_mask is None:
        mask_add = jnp.zeros((B, 1, S), jnp.float32)
    else:
        mask_add = jnp.where(key_padding_mask.astype(bool), -jnp.inf, 0.0
                             ).astype(jnp.float32).reshape(B, 1, S)

    Bb = batch_block if batch_block is not None else _auto_batch_block(B, T, S)
    assert B % Bb == 0

    kernel = functools.partial(_mha_kernel, num_heads=H, head_dim=Dh,
                               weights_mode=weights_mode)

    out_shapes = [jax.ShapeDtypeStruct((B, T, E), odt)]
    out_specs = [pl.BlockSpec((Bb, T, E), lambda b, h: (b, 0, 0))]
    scratch = [pltpu.VMEM((Bb * T, E), jnp.float32)]          # f32 out accumulator
    if weights_mode == "head":
        out_shapes.append(jax.ShapeDtypeStruct((B, H, T, S), wdt))
        out_specs.append(pl.BlockSpec((Bb, 1, T, S), lambda b, h: (b, h, 0, 0)))
    elif weights_mode == "mean":
        out_shapes.append(jax.ShapeDtypeStruct((B, T, S), wdt))
        out_specs.append(pl.BlockSpec((Bb, T, S), lambda b, h: (b, 0, 0)))
        scratch.append(pltpu.VMEM((Bb, T, S), jnp.float32))   # head-mean accumulator

    results = pl.pallas_call(
        kernel,
        out_shape=tuple(out_shapes),
        grid_spec=pltpu.PrefetchScalarGridSpec(
            num_scalar_prefetch=0,
            grid=(B // Bb, H),                                # head axis innermost
            in_specs=[
                pl.BlockSpec((Bb, T, E), lambda b, h: (b, 0, 0)),        # x (B,T,E)
                pl.BlockSpec((Bb, 1, T, S), lambda b, h: (b, h, 0, 0)),  # attn_bias
                pl.BlockSpec((Bb, 1, S), lambda b, h: (b, 0, 0)),        # additive mask
                pl.BlockSpec((1, 3, E, Dh), lambda b, h: (h, 0, 0, 0)),  # Wqkv per head
                pl.BlockSpec((1, 3, 1, Dh), lambda b, h: (h, 0, 0, 0)),  # bqkv per head
                pl.BlockSpec((1, Dh, E), lambda b, h: (h, 0, 0)),        # Wo per head
                pl.BlockSpec((1, E), lambda b, h: (0, 0)),               # bo
            ],
            out_specs=tuple(out_specs),
            scratch_shapes=tuple(scratch),
        ),
        compiler_params=pltpu.CompilerParams(
            dimension_semantics=("parallel", "arbitrary"),    # batch || , heads reduce
            vmem_limit_bytes=_vmem_limit_bytes(),
        ),
    )(x, bias, mask_add, wqkv, bqkv, wo, bo)

    if weights_mode == "none":
        (out_bte,) = results
        attn_weights = None
    else:
        out_bte, w = results
        if weights_mode == "head":
            attn_weights = jnp.transpose(w, (1, 0, 2, 3))     # (H,B,T,S) PyTorch layout
        else:
            attn_weights = w                                  # (B,T,S) head-mean

    attn = jnp.transpose(out_bte, (1, 0, 2))                  # (T,B,E), leading dims only
    return attn, attn_weights


# ----------------------------------------------------------------------------
# Pure-JAX reference (mirrors the PyTorch module in eval mode)
# ----------------------------------------------------------------------------
def _reference_forward(query, params, attn_bias, key_padding_mask, *, num_heads):
    T, B, E = query.shape
    S = T
    Dh = E // num_heads
    scaling = Dh ** (-0.5)
    x = query.astype(jnp.float32)
    q = (x @ params["wq"].T + params["bq"]) * scaling
    k = x @ params["wk"].T + params["bk"]
    v = x @ params["wv"].T + params["bv"]

    def split(t):
        return jnp.transpose(t.reshape(T, B * num_heads, Dh), (1, 0, 2))

    q, k, v = split(q), split(k), split(v)
    w = jnp.einsum("btd,bsd->bts", q, k)
    w = w + attn_bias.reshape(B * num_heads, T, S)
    kpm = key_padding_mask.astype(bool)[:, None, None, :]
    w = w.reshape(B, num_heads, T, S)
    w = jnp.where(kpm, -jnp.inf, w).reshape(B * num_heads, T, S)
    p = jax.nn.softmax(w, axis=-1)
    a = jnp.einsum("bts,bsd->btd", p, v)
    a = jnp.transpose(a, (1, 0, 2)).reshape(T, B, E)
    a = a @ params["wo"].T + params["bo"]
    return a, p.reshape(B, num_heads, T, S)


def _xavier_uniform(key, shape, gain=1.0):
    fan_out, fan_in = shape
    bound = gain * math.sqrt(6.0 / (fan_in + fan_out))
    return jax.random.uniform(key, shape, jnp.float32, -bound, bound)


if __name__ == "__main__":
    # Config: embedding_dim=32, num_attention_heads=4, kdim=vdim=None, bias=True
    tgt_len, bsz, emb, num_heads = 8, 2, 32, 4

    root = jax.random.PRNGKey(0)
    keys = jax.random.split(root, 10)

    gain = 1.0 / math.sqrt(2.0)          # qkv_same_dim init from reset_parameters()
    params = {
        "wq": _xavier_uniform(keys[0], (emb, emb), gain),
        "wk": _xavier_uniform(keys[1], (emb, emb), gain),
        "wv": _xavier_uniform(keys[2], (emb, emb), gain),
        "wo": _xavier_uniform(keys[3], (emb, emb), 1.0),
        "bq": 0.1 * jax.random.normal(keys[4], (emb,), jnp.float32),
        "bk": 0.1 * jax.random.normal(keys[5], (emb,), jnp.float32),
        "bv": 0.1 * jax.random.normal(keys[6], (emb,), jnp.float32),
        "bo": jnp.zeros((emb,), jnp.float32),
    }

    query = jax.random.normal(keys[7], (tgt_len, bsz, emb), jnp.float32)
    attn_bias = 0.5 * jax.random.normal(keys[8], (bsz, num_heads, tgt_len, tgt_len),
                                        jnp.float32)
    # mask the last key position of batch element 1
    key_padding_mask = jnp.zeros((bsz, tgt_len), jnp.float32).at[1, -1].set(1.0)

    ref_attn, ref_p = _reference_forward(
        query, params, attn_bias, key_padding_mask, num_heads=num_heads)
    ref_mean = jnp.mean(ref_p, axis=1)

    # Fast path: bf16 matmuls + fused in-kernel head-mean of the attention probs.
    attn, w_mean = massformer_mha_forward(
        query, params, attn_bias, key_padding_mask, num_heads=num_heads)
    attn = jax.block_until_ready(attn)
    w_mean = jax.block_until_ready(w_mean)
    assert attn.shape == (tgt_len, bsz, emb)
    assert w_mean.shape == (bsz, tgt_len, tgt_len)
    assert jnp.allclose(attn, ref_attn, atol=1e-1, rtol=1e-1)
    assert jnp.allclose(w_mean.astype(jnp.float32), ref_mean, atol=1e-1, rtol=1e-1)

    # Strict f32 path with per-head attention weights (tighter check).
    attn32, w_heads = massformer_mha_forward(
        query, params, attn_bias, key_padding_mask, num_heads=num_heads,
        need_head_weights=True, compute_dtype=jnp.float32)
    attn32 = jax.block_until_ready(attn32)
    w_heads = jax.block_until_ready(w_heads)
    assert w_heads.shape == (num_heads, bsz, tgt_len, tgt_len)
    assert jnp.allclose(attn32, ref_attn, atol=2e-2, rtol=2e-2)
    assert jnp.allclose(w_heads, jnp.transpose(ref_p, (1, 0, 2, 3)),
                        atol=2e-2, rtol=2e-2)

    # need_weights=False path: the probs output (and its HBM writeback) is skipped.
    attn_nw, w_none = massformer_mha_forward(
        query, params, attn_bias, key_padding_mask, num_heads=num_heads,
        need_weights=False)
    attn_nw = jax.block_until_ready(attn_nw)
    assert w_none is None
    assert jnp.allclose(attn_nw, ref_attn, atol=1e-1, rtol=1e-1)

    print("KERNEL_OK")
</pallas_src>

<mosaic_0001>
module attributes {stable_mosaic.version = 11 : i64} {
  func.func @_mha_kernel(%arg0: i32, %arg1: i32, %arg2: memref<1x8x32xbf16, #tpu.memory_space<vmem>>, %arg3: memref<1x1x8x8xf32, #tpu.memory_space<vmem>>, %arg4: memref<1x1x8xf32, #tpu.memory_space<vmem>>, %arg5: memref<1x3x32x8xbf16, #tpu.memory_space<vmem>>, %arg6: memref<1x3x1x8xf32, #tpu.memory_space<vmem>>, %arg7: memref<1x8x32xbf16, #tpu.memory_space<vmem>>, %arg8: memref<1x32xf32, #tpu.memory_space<vmem>>, %arg9: memref<1x8x32xf32, #tpu.memory_space<vmem>>, %arg10: memref<1x8x8xbf16, #tpu.memory_space<vmem>>, %arg11: memref<8x32xf32, #tpu.memory_space<vmem>>, %arg12: memref<1x8x8xf32, #tpu.memory_space<vmem>>) attributes {dimension_semantics = [#tpu.dimension_semantics<parallel>, #tpu.dimension_semantics<arbitrary>], iteration_bounds = array<i64: 2, 4>, scalar_prefetch = 0 : i64, scratch_operands = 2 : i64, tpu.core_type = #tpu.core_type<tc>, window_params = [{transform_indices = @transform_0, window_bounds = array<i64: 1, 8, 32>}, {transform_indices = @transform_1, window_bounds = array<i64: 1, 1, 8, 8>}, {transform_indices = @transform_2, window_bounds = array<i64: 1, 1, 8>}, {transform_indices = @transform_3, window_bounds = array<i64: 1, 3, 32, 8>}, {transform_indices = @transform_4, window_bounds = array<i64: 1, 3, 1, 8>}, {transform_indices = @transform_5, window_bounds = array<i64: 1, 8, 32>}, {pipeline_mode = #tpu.pipeline_mode<synchronous>, transform_indices = @transform_6, window_bounds = array<i64: 1, 32>}, {transform_indices = @transform_7, window_bounds = array<i64: 1, 8, 32>}, {transform_indices = @transform_8, window_bounds = array<i64: 1, 8, 8>}]} {
    %c0 = arith.constant 0 : index
    %c0_0 = arith.constant 0 : index
    %c0_1 = arith.constant 0 : index
    %0 = vector.load %arg2[%c0, %c0_0, %c0_1] : memref<1x8x32xbf16, #tpu.memory_space<vmem>>, vector<1x8x32xbf16>
    %1 = vector.shape_cast %0 : vector<1x8x32xbf16> to vector<8x32xbf16>
    %c0_2 = arith.constant 0 : index
    %c0_3 = arith.constant 0 : index
    %c0_4 = arith.constant 0 : index
    %c0_5 = arith.constant 0 : index
    %2 = vector.load %arg5[%c0_2, %c0_3, %c0_4, %c0_5] : memref<1x3x32x8xbf16, #tpu.memory_space<vmem>>, vector<1x1x32x8xbf16>
    %3 = vector.shape_cast %2 : vector<1x1x32x8xbf16> to vector<32x8xbf16>
    %cst = arith.constant dense<0.000000e+00> : vector<8x8xf32>
    %4 = tpu.matmul %1, %3, %cst {dimension_numbers = #tpu.dot_dimension_numbers<[1], [0], [0], [1], [0, 0, 1, 1], [], []>} : vector<8x32xbf16>, vector<32x8xbf16>, vector<8x8xf32> -> vector<8x8xf32>
    %c0_6 = arith.constant 0 : index
    %c0_7 = arith.constant 0 : index
    %c0_8 = arith.constant 0 : index
    %c0_9 = arith.constant 0 : index
    %5 = vector.load %arg6[%c0_6, %c0_7, %c0_8, %c0_9] : memref<1x3x1x8xf32, #tpu.memory_space<vmem>>, vector<1x1x1x8xf32>
    %6 = vector.shape_cast %5 : vector<1x1x1x8xf32> to vector<1x8xf32>
    %7 = vector.broadcast %6 : vector<1x8xf32> to vector<8x8xf32>
    %8 = arith.addf %4, %7 : vector<8x8xf32>
    %9 = vector.shape_cast %8 : vector<8x8xf32> to vector<1x8x8xf32>
    %10 = arith.truncf %9 : vector<1x8x8xf32> to vector<1x8x8xbf16>
    %c0_10 = arith.constant 0 : index
    %c1 = arith.constant 1 : index
    %c0_11 = arith.constant 0 : index
    %c0_12 = arith.constant 0 : index
    %11 = vector.load %arg5[%c0_10, %c1, %c0_11, %c0_12] : memref<1x3x32x8xbf16, #tpu.memory_space<vmem>>, vector<1x1x32x8xbf16>
    %12 = vector.shape_cast %11 : vector<1x1x32x8xbf16> to vector<32x8xbf16>
    %cst_13 = arith.constant dense<0.000000e+00> : vector<8x8xf32>
    %13 = tpu.matmul %1, %12, %cst_13 {dimension_numbers = #tpu.dot_dimension_numbers<[1], [0], [0], [1], [0, 0, 1, 1], [], []>} : vector<8x32xbf16>, vector<32x8xbf16>, vector<8x8xf32> -> vector<8x8xf32>
    %c0_14 = arith.constant 0 : index
    %c1_15 = arith.constant 1 : index
    %c0_16 = arith.constant 0 : index
    %c0_17 = arith.constant 0 : index
    %14 = vector.load %arg6[%c0_14, %c1_15, %c0_16, %c0_17] : memref<1x3x1x8xf32, #tpu.memory_space<vmem>>, vector<1x1x1x8xf32>
    %15 = vector.shape_cast %14 : vector<1x1x1x8xf32> to vector<1x8xf32>
    %16 = vector.broadcast %15 : vector<1x8xf32> to vector<8x8xf32>
    %17 = arith.addf %13, %16 : vector<8x8xf32>
    %18 = vector.shape_cast %17 : vector<8x8xf32> to vector<1x8x8xf32>
    %19 = arith.truncf %18 : vector<1x8x8xf32> to vector<1x8x8xbf16>
    %c0_18 = arith.constant 0 : index
    %c2 = arith.constant 2 : index
    %c0_19 = arith.constant 0 : index
    %c0_20 = arith.constant 0 : index
    %20 = vector.load %arg5[%c0_18, %c2, %c0_19, %c0_20] : memref<1x3x32x8xbf16, #tpu.memory_space<vmem>>, vector<1x1x32x8xbf16>
    %21 = vector.shape_cast %20 : vector<1x1x32x8xbf16> to vector<32x8xbf16>
    %cst_21 = arith.constant dense<0.000000e+00> : vector<8x8xf32>
    %22 = tpu.matmul %1, %21, %cst_21 {dimension_numbers = #tpu.dot_dimension_numbers<[1], [0], [0], [1], [0, 0, 1, 1], [], []>} : vector<8x32xbf16>, vector<32x8xbf16>, vector<8x8xf32> -> vector<8x8xf32>
    %c0_22 = arith.constant 0 : index
    %c2_23 = arith.constant 2 : index
    %c0_24 = arith.constant 0 : index
    %c0_25 = arith.constant 0 : index
    %23 = vector.load %arg6[%c0_22, %c2_23, %c0_24, %c0_25] : memref<1x3x1x8xf32, #tpu.memory_space<vmem>>, vector<1x1x1x8xf32>
    %24 = vector.shape_cast %23 : vector<1x1x1x8xf32> to vector<1x8xf32>
    %25 = vector.broadcast %24 : vector<1x8xf32> to vector<8x8xf32>
    %26 = arith.addf %22, %25 : vector<8x8xf32>
    %27 = vector.shape_cast %26 : vector<8x8xf32> to vector<1x8x8xf32>
    %28 = arith.truncf %27 : vector<1x8x8xf32> to vector<1x8x8xbf16>
    "tpu.trace_start"() <{level = 10 : i32, message = "btd,bsd->bts"}> : () -> ()
    %cst_26 = arith.constant dense<0.000000e+00> : vector<1x8x8xf32>
    %29 = tpu.matmul %10, %19, %cst_26 {dimension_numbers = #tpu.dot_dimension_numbers<[2], [2], [1], [1], [0, 0, 0, 1, 1, 1], [0], [0]>} : vector<1x8x8xbf16>, vector<1x8x8xbf16>, vector<1x8x8xf32> -> vector<1x8x8xf32>
    "tpu.trace_stop"() : () -> ()
    %c0_27 = arith.constant 0 : index
    %c0_28 = arith.constant 0 : index
    %c0_29 = arith.constant 0 : index
    %c0_30 = arith.constant 0 : index
    %30 = vector.load %arg3[%c0_27, %c0_28, %c0_29, %c0_30] : memref<1x1x8x8xf32, #tpu.memory_space<vmem>>, vector<1x1x8x8xf32>
    %31 = vector.shape_cast %30 : vector<1x1x8x8xf32> to vector<1x8x8xf32>
    %32 = arith.addf %29, %31 : vector<1x8x8xf32>
    %c0_31 = arith.constant 0 : index
    %c0_32 = arith.constant 0 : index
    %c0_33 = arith.constant 0 : index
    %33 = vector.load %arg4[%c0_31, %c0_32, %c0_33] : memref<1x1x8xf32, #tpu.memory_space<vmem>>, vector<1x1x8xf32>
    %34 = vector.broadcast %33 : vector<1x1x8xf32> to vector<1x8x8xf32>
    %35 = arith.addf %32, %34 : vector<1x8x8xf32>
    %cst_34 = arith.constant dense<0xFF800000> : vector<1x8xf32>
    %36 = vector.multi_reduction <maximumf>, %35, %cst_34 [2] : vector<1x8x8xf32> to vector<1x8xf32>
    %37 = vector.shape_cast %36 : vector<1x8xf32> to vector<1x8x1xf32>
    %38 = vector.broadcast %37 : vector<1x8x1xf32> to vector<1x8x8xf32>
    %39 = arith.subf %35, %38 : vector<1x8x8xf32>
    %40 = math.exp %39 : vector<1x8x8xf32>
    %cst_35 = arith.constant dense<0.000000e+00> : vector<1x8xf32>
    %41 = vector.multi_reduction <add>, %40, %cst_35 [2] : vector<1x8x8xf32> to vector<1x8xf32>
    %42 = vector.shape_cast %41 : vector<1x8xf32> to vector<1x8x1xf32>
    %43 = tpu.reciprocal %42 {approx = true} : vector<1x8x1xf32> -> vector<1x8x1xf32>
    %44 = vector.broadcast %43 : vector<1x8x1xf32> to vector<1x8x8xf32>
    %45 = arith.mulf %40, %44 : vector<1x8x8xf32>
    %c0_i32 = arith.constant 0 : i32
    %46 = arith.cmpi eq, %arg1, %c0_i32 : i32
    %47 = arith.extui %46 : i1 to i32
    %c0_i32_36 = arith.constant 0 : i32
    %48 = arith.cmpi ne, %47, %c0_i32_36 : i32
    scf.if %48 {
      %cst_58 = arith.constant 0.000000e+00 : f32
      %73 = vector.broadcast %cst_58 : f32 to vector<1x8x8xf32>
      %c0_59 = arith.constant 0 : index
      %c0_60 = arith.constant 0 : index
      %c0_61 = arith.constant 0 : index
      %74 = vector.load %arg12[%c0_59, %c0_60, %c0_61] : memref<1x8x8xf32, #tpu.memory_space<vmem>>, vector<1x8x8xf32>
      tpu.vector_store %arg12[%c0_59, %c0_60, %c0_61], %73 {strides = array<i32>} : memref<1x8x8xf32, #tpu.memory_space<vmem>>, vector<1x8x8xf32>,
    } else {
    }
    %c0_37 = arith.constant 0 : index
    %c0_38 = arith.constant 0 : index
    %c0_39 = arith.constant 0 : index
    %49 = vector.load %arg12[%c0_37, %c0_38, %c0_39] : memref<1x8x8xf32, #tpu.memory_space<vmem>>, vector<1x8x8xf32>
    %cst_40 = arith.constant 2.500000e-01 : f32
    %50 = vector.broadcast %cst_40 : f32 to vector<1x8x8xf32>
    %51 = arith.mulf %45, %50 : vector<1x8x8xf32>
    %52 = arith.addf %49, %51 : vector<1x8x8xf32>
    %c0_41 = arith.constant 0 : index
    %c0_42 = arith.constant 0 : index
    %c0_43 = arith.constant 0 : index
    %53 = vector.load %arg12[%c0_41, %c0_42, %c0_43] : memref<1x8x8xf32, #tpu.memory_space<vmem>>, vector<1x8x8xf32>
    tpu.vector_store %arg12[%c0_41, %c0_42, %c0_43], %52 {strides = array<i32>} : memref<1x8x8xf32, #tpu.memory_space<vmem>>, vector<1x8x8xf32>,
    %c3_i32 = arith.constant 3 : i32
    %54 = arith.cmpi eq, %arg1, %c3_i32 : i32
    %55 = arith.extui %54 : i1 to i32
    %c0_i32_44 = arith.constant 0 : i32
    %56 = arith.cmpi ne, %55, %c0_i32_44 : i32
    scf.if %56 {
      %c0_58 = arith.constant 0 : index
      %c0_59 = arith.constant 0 : index
      %c0_60 = arith.constant 0 : index
      %73 = vector.load %arg12[%c0_58, %c0_59, %c0_60] : memref<1x8x8xf32, #tpu.memory_space<vmem>>, vector<1x8x8xf32>
      %74 = arith.truncf %73 : vector<1x8x8xf32> to vector<1x8x8xbf16>
      %c0_61 = arith.constant 0 : index
      %c0_62 = arith.constant 0 : index
      %c0_63 = arith.constant 0 : index
      %75 = vector.load %arg10[%c0_61, %c0_62, %c0_63] : memref<1x8x8xbf16, #tpu.memory_space<vmem>>, vector<1x8x8xbf16>
      tpu.vector_store %arg10[%c0_61, %c0_62, %c0_63], %74 {strides = array<i32>} : memref<1x8x8xbf16, #tpu.memory_space<vmem>>, vector<1x8x8xbf16>,
    } else {
    }
    %57 = arith.truncf %45 : vector<1x8x8xf32> to vector<1x8x8xbf16>
    "tpu.trace_start"() <{level = 10 : i32, message = "bts,bsd->btd"}> : () -> ()
    %cst_45 = arith.constant dense<0.000000e+00> : vector<1x8x8xf32>
    %58 = tpu.matmul %57, %28, %cst_45 {dimension_numbers = #tpu.dot_dimension_numbers<[2], [1], [1], [2], [0, 0, 0, 1, 1, 2], [0], [0]>} : vector<1x8x8xbf16>, vector<1x8x8xbf16>, vector<1x8x8xf32> -> vector<1x8x8xf32>
    "tpu.trace_stop"() : () -> ()
    %59 = vector.shape_cast %58 : vector<1x8x8xf32> to vector<8x8xf32>
    %60 = arith.truncf %59 : vector<8x8xf32> to vector<8x8xbf16>
    %c0_46 = arith.constant 0 : index
    %c0_47 = arith.constant 0 : index
    %c0_48 = arith.constant 0 : index
    %61 = vector.load %arg7[%c0_46, %c0_47, %c0_48] : memref<1x8x32xbf16, #tpu.memory_space<vmem>>, vector<1x8x32xbf16>
    %62 = vector.shape_cast %61 : vector<1x8x32xbf16> to vector<8x32xbf16>
    %cst_49 = arith.constant dense<0.000000e+00> : vector<8x32xf32>
    %63 = tpu.matmul %60, %62, %cst_49 {dimension_numbers = #tpu.dot_dimension_numbers<[1], [0], [0], [1], [0, 0, 1, 1], [], []>} : vector<8x8xbf16>, vector<8x32xbf16>, vector<8x32xf32> -> vector<8x32xf32>
    %c0_i32_50 = arith.constant 0 : i32
    %64 = arith.cmpi eq, %arg1, %c0_i32_50 : i32
    %65 = arith.extui %64 : i1 to i32
    %c0_i32_51 = arith.constant 0 : i32
    %66 = arith.cmpi ne, %65, %c0_i32_51 : i32
    scf.if %66 {
      %c0_58 = arith.constant 0 : index
      %c0_59 = arith.constant 0 : index
      %73 = vector.load %arg8[%c0_58, %c0_59] : memref<1x32xf32, #tpu.memory_space<vmem>>, vector<1x32xf32>
      %74 = vector.shape_cast %73 : vector<1x32xf32> to vector<1x32xf32>
      %75 = vector.broadcast %74 : vector<1x32xf32> to vector<8x32xf32>
      %c0_60 = arith.constant 0 : index
      %c0_61 = arith.constant 0 : index
      %76 = vector.load %arg11[%c0_60, %c0_61] : memref<8x32xf32, #tpu.memory_space<vmem>>, vector<8x32xf32>
      tpu.vector_store %arg11[%c0_60, %c0_61], %75 {strides = array<i32>} : memref<8x32xf32, #tpu.memory_space<vmem>>, vector<8x32xf32>,
    } else {
    }
    %c0_52 = arith.constant 0 : index
    %c0_53 = arith.constant 0 : index
    %67 = vector.load %arg11[%c0_52, %c0_53] : memref<8x32xf32, #tpu.memory_space<vmem>>, vector<8x32xf32>
    %68 = arith.addf %67, %63 : vector<8x32xf32>
    %c0_54 = arith.constant 0 : index
    %c0_55 = arith.constant 0 : index
    %69 = vector.load %arg11[%c0_54, %c0_55] : memref<8x32xf32, #tpu.memory_space<vmem>>, vector<8x32xf32>
    tpu.vector_store %arg11[%c0_54, %c0_55], %68 {strides = array<i32>} : memref<8x32xf32, #tpu.memory_space<vmem>>, vector<8x32xf32>,
    %c3_i32_56 = arith.constant 3 : i32
    %70 = arith.cmpi eq, %arg1, %c3_i32_56 : i32
    %71 = arith.extui %70 : i1 to i32
    %c0_i32_57 = arith.constant 0 : i32
    %72 = arith.cmpi ne, %71, %c0_i32_57 : i32
    scf.if %72 {
      %c0_58 = arith.constant 0 : index
      %c0_59 = arith.constant 0 : index
      %73 = vector.load %arg11[%c0_58, %c0_59] : memref<8x32xf32, #tpu.memory_space<vmem>>, vector<8x32xf32>
      %74 = vector.shape_cast %73 : vector<8x32xf32> to vector<1x8x32xf32>
      %c0_60 = arith.constant 0 : index
      %c0_61 = arith.constant 0 : index
      %c0_62 = arith.constant 0 : index
      %75 = vector.load %arg9[%c0_60, %c0_61, %c0_62] : memref<1x8x32xf32, #tpu.memory_space<vmem>>, vector<1x8x32xf32>
      tpu.vector_store %arg9[%c0_60, %c0_61, %c0_62], %74 {strides = array<i32>} : memref<1x8x32xf32, #tpu.memory_space<vmem>>, vector<1x8x32xf32>,
    } else {
    }
    return
  }
  func.func @transform_0(%arg0: i32, %arg1: i32) -> (i32, i32, i32) {
    %c0_i32 = arith.constant 0 : i32
    %c0_i32_0 = arith.constant 0 : i32
    %c0_i32_1 = arith.constant 0 : i32
    return %arg0, %c0_i32, %c0_i32_0 : i32, i32, i32
  }
  func.func @transform_1(%arg0: i32, %arg1: i32) -> (i32, i32, i32, i32) {
    %c0_i32 = arith.constant 0 : i32
    %c0_i32_0 = arith.constant 0 : i32
    %c0_i32_1 = arith.constant 0 : i32
    return %arg0, %arg1, %c0_i32, %c0_i32_0 : i32, i32, i32, i32
  }
  func.func @transform_2(%arg0: i32, %arg1: i32) -> (i32, i32, i32) {
    %c0_i32 = arith.constant 0 : i32
    %c0_i32_0 = arith.constant 0 : i32
    %c0_i32_1 = arith.constant 0 : i32
    return %arg0, %c0_i32, %c0_i32_0 : i32, i32, i32
  }
  func.func @transform_3(%arg0: i32, %arg1: i32) -> (i32, i32, i32, i32) {
    %c0_i32 = arith.constant 0 : i32
    %c0_i32_0 = arith.constant 0 : i32
    %c0_i32_1 = arith.constant 0 : i32
    %c0_i32_2 = arith.constant 0 : i32
    return %arg1, %c0_i32, %c0_i32_0, %c0_i32_1 : i32, i32, i32, i32
  }
  func.func @transform_4(%arg0: i32, %arg1: i32) -> (i32, i32, i32, i32) {
    %c0_i32 = arith.constant 0 : i32
    %c0_i32_0 = arith.constant 0 : i32
    %c0_i32_1 = arith.constant 0 : i32
    %c0_i32_2 = arith.constant 0 : i32
    return %arg1, %c0_i32, %c0_i32_0, %c0_i32_1 : i32, i32, i32, i32
  }
  func.func @transform_5(%arg0: i32, %arg1: i32) -> (i32, i32, i32) {
    %c0_i32 = arith.constant 0 : i32
    %c0_i32_0 = arith.constant 0 : i32
    %c0_i32_1 = arith.constant 0 : i32
    return %arg1, %c0_i32, %c0_i32_0 : i32, i32, i32
  }
  func.func @transform_6(%arg0: i32, %arg1: i32) -> (i32, i32) {
    %c0_i32 = arith.constant 0 : i32
    %c0_i32_0 = arith.constant 0 : i32
    %c0_i32_1 = arith.constant 0 : i32
    return %c0_i32, %c0_i32_0 : i32, i32
  }
  func.func @transform_7(%arg0: i32, %arg1: i32) -> (i32, i32, i32) {
    %c0_i32 = arith.constant 0 : i32
    %c0_i32_0 = arith.constant 0 : i32
    %c0_i32_1 = arith.constant 0 : i32
    return %arg0, %c0_i32, %c0_i32_0 : i32, i32, i32
  }
  func.func @transform_8(%arg0: i32, %arg1: i32) -> (i32, i32, i32) {
    %c0_i32 = arith.constant 0 : i32
    %c0_i32_0 = arith.constant 0 : i32
    %c0_i32_1 = arith.constant 0 : i32
    return %arg0, %c0_i32, %c0_i32_0 : i32, i32, i32
  }
}

</mosaic_0001>

<bundles_post_ra>
// kernel: tpu_custom_call.1
= control target key start
LH: loop header
LB: loop body
LE: loop exit
PB: predicated region body
PF: predicated region fallthrough
CT: control target
= control target key end

     0   :  { %s1640_s0 = inlined_call_operand.vmem [shape: bf16[2,8,32], index: 0, kind: input, shape index: {}]   ;;  %s1641_s1 = inlined_call_operand.vmem [shape: f32[2,4,8,8], index: 1, kind: input, shape index: {}]   ;;  %s1642_s2 = inlined_call_operand.vmem [shape: f32[2,1,8], index: 2, kind: input, shape index: {}]   ;;  %s1643_s3 = inlined_call_operand.vmem [shape: bf16[4,3,32,8], index: 3, kind: input, shape index: {}]   ;;  %s1644_s4 = inlined_call_operand.vmem [shape: f32[4,3,1,8], index: 4, kind: input, shape index: {}]   ;;  %s1645_s5 = inlined_call_operand.vmem [shape: bf16[4,8,32], index: 5, kind: input, shape index: {}]   ;;  %s1646_s6 = inlined_call_operand.vmem [shape: f32[1,32], index: 6, kind: input, shape index: {}]   ;;  %s1647_s7 = inlined_call_operand.hbm [shape: f32[2,8,32], index: 7, kind: output, shape index: {0}]   ;;  %s1648_s8 = inlined_call_operand.hbm [shape: bf16[2,8,8], index: 8, kind: output, shape index: {1}]  }
   0x1   :  { %1650 = sst [smem:[#allocation12_spill]] %s1640_s0 }
   0x2   :  { %1651 = sst [smem:[#allocation13_spill]] %s1643_s3 }
   0x3   :  { %1652 = sst [smem:[#allocation14_spill]] %s1644_s4 }
   0x4   :  { %1653 = sst [smem:[#allocation15_spill]] %s1645_s5 }
   0x5   :  { %14 = vsyncpa [#allocation5], 0 }
   0x6   :  { %16 = vsyncpa [#allocation5 + $0x1], 0 }
   0x7   :  { %17 = vsyncpa [#allocation7], 0 }
   0x8   :  { %19 = vsyncpa [#allocation7 + $0x1], 0  ;;  %s1392_s27 = smov 0   ;;  %s1394_s28 = smov 0  }
   0x9   :  { %s1396_s29 = smov 0   ;;  %s1398_s30 = smov 0  }
   0xa   :  { %s1400_s9 = smov 0   ;;  %s1402_s10 = smov 0  }
   0xb   :  { %s1404_s11 = smov 0   ;;  %s1406_s12 = smov 0  }
   0xc LB: > { %s1021_s13 = sadd.s32 4294967295, %s1340_s12   ;;  %s1022_s14 = sadd.s32 4294967294, %s1340_s12   ;;  %s1340_s12 = sphi %s1406_s12, %s25_s12   ;;  %s1336_s11 = sphi %s1404_s11, %s1672_s11   ;;  %s1332_s10 = sphi %s1402_s10, %s1671_s10   ;;  %s1328_s9 = sphi %s1400_s9, %s1670_s9   ;;  %s1324_s30 = sphi %s1398_s30, %s1669_s30   ;;  %s1320_s29 = sphi %s1396_s29, %s1668_s29   ;;  %s1316_s28 = sphi %s1394_s28, %s1667_s28   ;;  %s1312_s27 = sphi %s1392_s27, %s1666_s27  }
   0xd   : > { %s34_s15 = sadd.s32 1, %s1332_s10  ;;  %s37_s16 = sadd.s32 1, %s1336_s11 }
   0xe   : > { %p35_p0 = scmp.ge.s32.totalorder %s34_s15, 4  ;;  %p233_p1 = scmp.ne.s32.totalorder %s1320_s29, %s1316_s28 }
   0xf   : > { %p234_p2 = scmp.eq.s32.totalorder %s1021_s13, 7  ;;  %p239_p4 = scmp.ne.s32.totalorder %s1316_s28, %s1312_s27 }
  0x10   : > { %s1674_s15 = smov (%p35_p0, %s34_s15), 0  ;;  %s1676_s16 = smov (!%p35_p0, %s37_s16), %s1336_s11 }
  0x11   : > { %1654 = sst [smem:[#allocation10_spill]] %s1674_s15  ;;  %p1441_p3 = por %p234_p2, %p233_p1 }
  0x12   : > { %p39_p5 = scmp.ge.s32.totalorder %s1676_s16, 2  ;;  %p240_p6 = scmp.eq.s32.totalorder %s1022_s14, 7 }
  0x13   : > { %p1025_p7 = scmp.ge.s32.totalorder %s1340_s12, 1  ;;  %p333_p8 = scmp.lt.s32.totalorder %s1340_s12, 9 }
  0x14   : > { %s1678_s16 = smov (%p39_p5, %s1676_s16), 0  ;;  %p1451_p9 = por %p240_p6, %p239_p4 }
  0x15   : > { %1656 = sst [smem:[#allocation11_spill]] %s1678_s16  ;;  %p334_p10 = pnand %p1025_p7, %p333_p8 }
  0x16   : > { %s220_s19 = ssub.s32 %s1336_s11, %s1678_s16  ;;  %s223_s20 = sadd.s32 1, %s1320_s29 }
  0x17   : > { %p221_p11 = scmp.eq.s32.totalorder %s220_s19, 0  ;;  %337 = sbr.rel (%p334_p10) target bundleno = 1242 (0x4da), region = 48 }
  0x18   : > { %p401_p12 = scmp.lt.s32.totalorder (!%p334_p10), %s1324_s30, 3  ;;  %s1463_s22 = sand.u32 (!%p334_p10), 1, %s1316_s28  }
  0x19   : > { %s1459_s21 = scalar_select %p221_p11, %s1320_s29, %s223_s20  }
  0x1a   : > { %s1658_s5 = sld [smem:[#allocation15_spill]] (!%p334_p10)  ;;  %p395_p13 = scmp.lt.s32.totalorder (!%p334_p10), %s1328_s9, 1 }
  0x1b   : > { %s1659_s3 = sld [smem:[#allocation13_spill]] (!%p334_p10)  ;;  %p1057_p0 = scmp.ne.s32.totalorder (!%p334_p10), %s1324_s30, 0 }
  0x1c   : > { %v1342_v0 = vmov 0.0   ;;  %s1470_s25 = scalar_select %p401_p12, %s1324_s30, 3  ;;  %vm1343_vm0 = vmmov 0   ;;  %vm448_vm1 = vcmask 261120   ;;  %vm626_vm2 = vcmask 64512  }
  0x1d   : > { %1093 = vmatprep.subr.bf16.mxu1 %v1342_v0  ;;  %1085 = vmatprep.subr.bf16.mxu0 %v1342_v0  ;;  %s1491_s15 = scalar_select %p395_p13, %s1328_s9, 1 }
  0x1e   : > { %1097 = vmatprep.mubr.msk.bf16.mxu1 %vm1343_vm0, %v1342_v0  ;;  %1089 = vmatprep.mubr.msk.bf16.mxu0 %vm1343_vm0, %v1342_v0  ;;  %s1127_s26 = smul.u32 48, %s1470_s25  ;;  %s1032_s13 = sshll.u32 %s1470_s25, 2 }
  0x1f   : > { %s1660_s0 = sld [smem:[#allocation12_spill]]  ;;  %s1128_s14 = smul.u32 3, %s1470_s25 }
  0x20   : > { %s1481_s20 = scalar_lea.vmem %s1658_s5, %s1032_s13  ;;  %s1028_s13 = sshll.u32 %s1491_s15, 2 }
  0x21   : > { %s1487_s16 = scalar_lea.vmem %s1659_s3, %s1127_s26  ;;  %s1661_s4 = sld [smem:[#allocation14_spill]] }
  0x22   : > { %v1208_v1 = vld [vmem:[%s1487_s16 + $0x18] sm:$0xff]   ;;  %v1209_v2 = vld [vmem:[%s1487_s16 + $0x8] sm:$0xff]   ;;  %v1210_v3 = vld [vmem:[%s1487_s16 + $0x10] sm:$0xff]   ;;  %s409_s5 = scalar_lea.vmem %s1642_s2, %s1491_s15 }
  0x23   : > { %1094 = vmatpush3.bf16.msra.mxu1 %v1208_v1  ;;  %1086 = vmatpush3.bf16.msra.mxu0 %v1209_v2  ;;  %v1211_v4 = vld [vmem:[%s1487_s16] sm:$0xff]   ;;  %v1212_v21 = vld [vmem:[%s1487_s16 + $0x28] sm:$0xff]  }
  0x24   : > { %1095 = vmatprep.subr.bf16.mxu1 %v1342_v0  ;;  %1087 = vmatprep.subr.bf16.mxu0 %v1342_v0  ;;  %v1213_v22 = vld [vmem:[%s1487_s16 + $0x20] sm:$0xff]  }
  0x25   : > { %s398_s26 = scalar_lea.vmem %s1660_s0, %s1028_s13  ;;  %v1056_v25 = vld [vmem:[%s409_s5] ss:$0 sm:$0xff] }
  0x26   : > { %v424_v5 = vld [vmem:[%s398_s26] sm:$0xf]  ;;  %s404_s26 = sadd.s32 %s1028_s13, %s1470_s25 }
  0x27   : > { %1096 = vmatpush3.bf16.msra.mxu1 %v1210_v3  ;;  %1088 = vmatpush3.bf16.msra.mxu0 %v1211_v4  ;;  %s1516_s24 = scalar_lea.vmem %s1661_s4, %s1128_s14  ;;  %s1030_s14 = sshll.u32 %s404_s26, 3 }
  0x28   : > { %1109 = vmatprep.subr.bf16.mxu1 %v1342_v0  ;;  %1101 = vmatprep.subr.bf16.mxu0 %v1342_v0  ;;  %v1042_v6 = vld [vmem:[%s1516_s24 + $0x1] ss:$0 sm:$0xff]  ;;  %v1033_v11 = vld [vmem:[%s1516_s24] ss:$0 sm:$0xff]  ;;  %s406_s0 = scalar_lea.vmem %s1641_s1, %s1030_s14  ;;  %v1051_v40 = vld [vmem:[%s1516_s24 + $0x2] ss:$0 sm:$0xff] }
  0x29   : > { %v625_v23 = vld [vmem:[%s406_s0] sm:$0xff]  ;;  %s1662_s0 = sshll.u32 %s1463_s22, 3  ;;  %s1663_s4 = sshll.u32 %s1463_s22, 2 }
  0x2a   : > { %1098 = vmatmul.mubr.msk.bf16.vlgmr.msra.gmra.mxu1 %vm448_vm1, %v424_v5  ;;  %1090 = vmatmul.mubr.msk.bf16.vlgmr.msra.gmra.mxu0 %vm448_vm1, %v424_v5  ;;  %s1541_s3 = scalar_lea.vmem [#allocation4], %s1662_s0  ;;  %s1545_s5 = scalar_lea.vmem [#allocation6], %s1663_s4 }
  0x2b   : > { %1111 = vmatprep.mubr.msk.bf16.mxu1 %vm1343_vm0, %v1342_v0  ;;  %1105 = vmatprep.mubr.msk.bf16.mxu0 %vm1343_vm0, %v1342_v0 }
  0x2c   : > { %1102 = vmatpush3.bf16.msra.mxu0 %v1212_v21 }
  0x2d   : > { %1103 = vmatprep.subr.bf16.mxu0 %v1342_v0 }
  0x30   : > { %1104 = vmatpush3.bf16.msra.mxu0 %v1213_v22 }
  0x33   : > { %1106 = vmatmul.mubr.msk.bf16.vlgmr.msra.gmra.mxu0 %vm448_vm1, %v424_v5 }
  0xea   : > { %v552_v7 = vpop.f32.mrf.mxu1  ;;  %v486_v9 = vpop.f32.mrf.mxu0 }
  0xeb   : > { %v553_v8 = vadd.f32 %v1042_v6, %v552_v7  ;;  %v487_v16 = vadd.f32 %v1033_v11, %v486_v9 }
  0xec   : > { %v1099_v10 = vpop.f32.mrf.mxu1  ;;  %v1091_v13 = vpop.f32.mrf.mxu0 }
  0xed   : > { %v558_v12 = vpack.c.bf16 %v553_v8, %v553_v8  ;;  %v492_v20 = vpack.c.bf16 %v487_v16, %v487_v16 }
  0xee   : > { %v555_v14 = vpop.f32.mrf.mxu1  ;;  %v489_v17 = vpop.f32.mrf.mxu0 }
  0xef   : > { %v631_v15 = vsel %vm626_vm2, %v558_v12, 0 }
  0xf0   : > { %v1100_v18 = vpop.f32.mrf.mxu1  ;;  %1110 = vmatpush3.bf16.xpose.msra.mxu1 %v631_v15  ;;  %v1092_v19 = vpop.f32.mrf.mxu0 }
  0xf3   : > { %v618_v37 = vpop.f32.mrf.mxu0 }
  0xf4   : > { %v619_v42 = vadd.f32 %v1051_v40, %v618_v37 }
  0xf5   : > { %v1107_v38 = vpop.f32.mrf.mxu0 }
  0xf6   : > { %v624_v43 = vpack.c.bf16 %v619_v42, %v619_v42 }
  0xf7   : > { %1112 = vmatmul.mubr.msk.bf16.vlgmr.msra.gmra.mxu1 %vm626_vm2, %v492_v20  ;;  %v621_v39 = vpop.f32.mrf.mxu0 }
  0xf9   : > { %v1108_v41 = vpop.f32.mrf.mxu0 }
 0x1b7   : > { %v667_v24 = vpop.f32.mrf.mxu1 }
 0x1b8   : > { %v668_v26 = vadd.f32 %v667_v24, %v625_v23 }
 0x1b9   : > { %v1113_v27 = vpop.f32.mrf.mxu1 }
 0x1ba   : > { %v680_v28 = vadd.f32 %v1056_v25, %v668_v26 }
 0x1bb   : > { %v670_v29 = vpop.f32.mrf.mxu1 }
 0x1bc   : > { %v681_v30 = vsel %vm626_vm2, %v680_v28, -inf }
 0x1bd   : > { %682 = vmax.xlane.f32.xlu0 %v681_v30  ;;  %v1114_v31 = vpop.f32.mrf.mxu1 }
 0x246   : > { %v683_v32 = vpop.xlane.xlu0 %682 }
 0x247   : > { %v684_v33 = vsub.f32 %v680_v28, %v683_v32 }
 0x249   : > { %v685_v34 = vmul.f32 1.442695, %v684_v33 }
 0x24b   : > { %1214 = vpow2.f32 %v685_v34 }
 0x258   : > { %v1215_v35 = vpop.eup %1214 }
 0x259   : > { %v687_v36 = vsel %vm626_vm2, %v1215_v35, 0.0 }
 0x25a   : > { %688 = vadd.xlane.f32.xlu0 %v687_v36 }
 0x2e3   : > { %v689_v44 = vpop.xlane.xlu0 %688 }
 0x2e4   : > { %1216 = vrcp.f32 %v689_v44 }
 0x2ee   : > { %695 = sbr.rel (%p1057_p0) target bundleno = 757 (0x2f5), region = 52 }
 0x2f1   : > { %v1217_v45 = vpop.eup %1216 }
 0x2f2   : > { %v691_v46 = vmul.f32 %v1217_v45, %v1215_v35 }
 0x2f3   : > { %v1344_v47 = vmov 0.0  }
 0x2f4   : > { %696 = vst.msk [vmem:[#allocation3] sm:$0xff] %vm626_vm2, %v1344_v47 }
 0x2f5 PF: > { %v698_v49 = vmul.f32 0.25, %v691_v46  ;;  %p1058_p1 = scmp.ne.s32.totalorder %s1324_s30, 3 }
 0x2fa   : > { %704 = sbr.rel (%p1058_p1) target bundleno = 777 (0x309), region = 56 }
 0x2fb   : > { %v697_v48 = vld [vmem:[#allocation3] sm:$0xff] }
 0x2fc   : > { %v699_v50 = vadd.f32 %v698_v49, %v697_v48 }
 0x2fe   : > { %700 = vst.msk [vmem:[#allocation3] sm:$0xff] %vm626_vm2, %v699_v50 }
 0x2ff   : > { %vm707_vm3 = vcmask 60416  }
 0x305   : > { %v705_v51 = vld [vmem:[#allocation3] sm:$0xff] }
 0x306   : > { %v706_v52 = vpack.c.bf16 %v705_v51, %v705_v51 }
 0x308   : > { %708 = vst.msk [vmem:[%s1545_s5] sm:$0xf] %vm707_vm3, %v706_v52 }
 0x309 PF: > { %1115 = vmatprep.subr.bf16.mxu0 %v1342_v0  ;;  %vm713_vm4 = vcmask 1043456   ;;  %1117 = vmatprep.mubr.msk.bf16.mxu0 %vm1343_vm0, %v1342_v0  ;;  %v709_v54 = vpack.c.bf16 %v691_v46, %v691_v46  ;;  %v758_v55 = vld [vmem:[%s1481_s20] sm:$0xf] }
 0x30a   : > { %v715_v53 = vsel %vm713_vm4, %v624_v43, 0  ;;  %1121 = vmatprep.subr.bf16.mxu1 %v1342_v0  ;;  %1123 = vmatprep.mubr.msk.bf16.mxu1 %vm1343_vm0, %v1342_v0  ;;  %v763_v56 = vsel %vm713_vm4, %v758_v55, 0 }
 0x30b   : > { %1116 = vmatpush3.bf16.msra.mxu0 %v715_v53  ;;  %1122 = vmatpush3.bf16.msra.mxu1 %v763_v56 }
 0x30e   : > { %1118 = vmatmul.mubr.msk.bf16.vlgmr.msra.gmra.mxu0 %vm626_vm2, %v709_v54 }
 0x3ce   : > { %v751_v57 = vpop.f32.mrf.mxu0 }
 0x3cf   : > { %v757_v58 = vpack.c.bf16 %v751_v57, %v751_v57 }
 0x3d0   : > { %v1119_v59 = vpop.f32.mrf.mxu0 }
 0x3d1   : > { %1124 = vmatmul.mubr.msk.bf16.vlgmr.msra.gmra.mxu1 %vm626_vm2, %v757_v58 }
 0x3d2   : > { %v754_v60 = vpop.f32.mrf.mxu0 }
 0x3d4   : > { %v1120_v61 = vpop.f32.mrf.mxu0 }
 0x491   : > { %v799_v62 = vpop.f32.mrf.mxu1 }
 0x493   : > { %v1125_v63 = vpop.f32.mrf.mxu1  ;;  %807 = sbr.rel (%p1057_p0) target bundleno = 1178 (0x49a), region = 60 }
 0x495   : > { %v802_v1 = vpop.f32.mrf.mxu1 }
 0x497   : > { %v1126_v2 = vpop.f32.mrf.mxu1 }
 0x498   : > { %v1062_v0 = vld [vmem:[%s1646_s6] ss:$0 sm:$0xff] }
 0x499   : > { %815 = vst.msk [vmem:[#allocation2] sm:$0xff] %vm448_vm1, %v1062_v0 }
 0x49a PF:  {}
 0x49f   : > { %821 = sbr.rel (%p1058_p1) target bundleno = 1196 (0x4ac), region = 64 }
 0x4a0   : > { %v816_v3 = vld [vmem:[#allocation2] sm:$0xff] }
 0x4a1   : > { %v817_v4 = vadd.f32 %v816_v3, %v799_v62 }
 0x4a3   : > { %818 = vst.msk [vmem:[#allocation2] sm:$0xff] %vm448_vm1, %v817_v4 }
 0x4aa   : > { %v822_v5 = vld [vmem:[#allocation2] sm:$0xff] }
 0x4ab   : > { %823 = vst.msk [vmem:[%s1541_s3] sm:$0xff] %vm448_vm1, %v822_v5 }
 0x4ac PF: > { %s1066_s25 = sshll.u32 %s1328_s9, 7  ;;  %s843_s26 = sshll.u32 %s1541_s3, 4  ;;  %s844_s26 = int_to_ptr.vmem [resolvable:$true] %s843_s26 }
 0x4ad   : > { %s841_s24 = scalar_lea.hbm %s1647_s7, %s1066_s25  ;;  %s825_s14 = scalar_lea.sflag [#allocation5], %s1463_s22 }
 0x4ae   : > { %s1218_s19 = scalar_lea.vmem %s844_s26, 128  ;;  %s1345_s30 = smov [#allocation4]  }
 0x4af   : > { %p1219_p2 = scmp.ne.s32.totalorder %s844_s26, %s1218_s19  ;;  %s1222_s23 = sshll.u32 %s1345_s30, 4  ;;  %s1223_s23 = int_to_ptr.vmem [resolvable:$false] %s1222_s23 }
 0x4b0   : > { %s1224_s0 = scalar_lea.vmem %s1223_s23, 256  ;;  %p1225_p6 = scmp.lt.s32.totalorder %s844_s26, %s1223_s23 }
 0x4b1   : > { %p1220_p4 = pnand %p1219_p2, %p1441_p3  ;;  %p1226_p7 = scmp.lt.s32.totalorder %s1224_s0, %s1218_s19 }
 0x4b3   : > { %p1221_p5 = pneg %p1220_p4  ;;  %p1227_p8 = por %p1226_p7, %p1225_p6 }
 0x4b5   : > { %p1228_p10 = pnand %p1227_p8, %p1221_p5 }
 0x4b7   : > { %1231 = shalt.err (!%p1228_p10)
}
 0x4b8   : > { %s1232_s4 = scalar_lea.hbm %s841_s24, 128  ;;  %s1236_s16 = scalar_lea.hbm %s1647_s7, 256 }
 0x4b9   : > { %p1233_p11 = scmp.ne.s32.totalorder %s841_s24, %s1232_s4  ;;  %p1237_p0 = scmp.lt.s32.totalorder %s841_s24, %s1647_s7 }
 0x4ba   : > { %p1238_p1 = scmp.lt.s32.totalorder %s1236_s16, %s1232_s4 }
 0x4bb   : > { %p1234_p12 = pnand %p1233_p11, %p1441_p3 }
 0x4bc   : > { %p1239_p2 = por %p1238_p1, %p1237_p0 }
 0x4bd   : > { %p1235_p13 = pneg %p1234_p12 }
 0x4bf   : > { %p1240_p4 = pnand %p1239_p2, %p1235_p13 }
 0x4c1   : > { %1243 = shalt.err (!%p1240_p4)
}
 0x4c2   : > { %1129 = dma.vmem_to_hbm [thread:$0]  (%p1441_p3), %s844_s26, 128, %s841_s24, %s825_s14  }
 0x4c3   : > { %s1067_s13 = sshll.u32 %s1328_s9, 6  ;;  %s856_s19 = sshll.u32 %s1545_s5, 4  ;;  %s857_s19 = int_to_ptr.vmem [resolvable:$true] %s856_s19 }
 0x4c4   : > { %s854_s0 = scalar_lea.hbm %s1648_s8, %s1067_s13  ;;  %s830_s3 = scalar_lea.sflag [#allocation7], %s1463_s22 }
 0x4c5   : > { %s1244_s15 = scalar_lea.vmem %s857_s19, 64  ;;  %s1346_s4 = smov [#allocation6]  }
 0x4c6   : > { %p1245_p5 = scmp.ne.s32.totalorder %s857_s19, %s1244_s15  ;;  %s1248_s16 = sshll.u32 %s1346_s4, 4  ;;  %s1249_s16 = int_to_ptr.vmem [resolvable:$false] %s1248_s16 }
 0x4c7   : > { %s1250_s25 = scalar_lea.vmem %s1249_s16, 128  ;;  %p1251_p8 = scmp.lt.s32.totalorder %s857_s19, %s1249_s16 }
 0x4c8   : > { %p1246_p6 = pnand %p1245_p5, %p1441_p3  ;;  %p1252_p10 = scmp.lt.s32.totalorder %s1250_s25, %s1244_s15 }
 0x4ca   : > { %p1247_p7 = pneg %p1246_p6  ;;  %p1253_p11 = por %p1252_p10, %p1251_p8 }
 0x4cc   : > { %p1254_p12 = pnand %p1253_p11, %p1247_p7 }
 0x4ce   : > { %1257 = shalt.err (!%p1254_p12)
}
 0x4cf   : > { %s1258_s9 = scalar_lea.hbm %s854_s0, 64  ;;  %s1262_s24 = scalar_lea.hbm %s1648_s8, 128 }
 0x4d0   : > { %p1259_p13 = scmp.ne.s32.totalorder %s854_s0, %s1258_s9  ;;  %p1263_p2 = scmp.lt.s32.totalorder %s854_s0, %s1648_s8 }
 0x4d1   : > { %p1264_p4 = scmp.lt.s32.totalorder %s1262_s24, %s1258_s9 }
 0x4d2   : > { %p1260_p0 = pnand %p1259_p13, %p1441_p3 }
 0x4d3   : > { %p1265_p5 = por %p1264_p4, %p1263_p2 }
 0x4d4   : > { %p1261_p1 = pneg %p1260_p0 }
 0x4d6   : > { %p1266_p6 = pnand %p1265_p5, %p1261_p1 }
 0x4d8   : > { %1269 = shalt.err (!%p1266_p6)
}
 0x4d9   : > { %1130 = dma.vmem_to_hbm [thread:$0]  (%p1441_p3), %s857_s19, 64, %s854_s0, %s830_s3  }
 0x4da PF: > { %p1140_p7 = scmp.ge.s32.totalorder %s1340_s12, 2  ;;  %s868_s20 = sand.u32 1, %s1312_s27  }
 0x4db   : > { %s869_s13 = scalar_lea.sflag [#allocation5], %s868_s20 }
 0x4dc   : > { %p1134_p8 = pnand %p1140_p7, %p1451_p9 }
 0x4de   : > { %p1135_p10 = pneg %p1134_p8 }
 0x4e0   : > { %1303 = dma.done.wait (%p1135_p10), %s869_s13, 128  }
 0x4e1   : > { %1305 = vsyncadd (%p1135_p10), %s869_s13, 4294967168  ;;  %s878_s30 = scalar_lea.sflag [#allocation7], %s868_s20 }
 0x4e2   : > { %1307 = dma.done.wait (%p1135_p10), %s878_s30, 64  }
 0x4e3   : > { %1309 = vsyncadd (%p1135_p10), %s878_s30, 4294967232  ;;  %s25_s12 = sadd.s32 1, %s1340_s12   ;;  %s1664_s17 = sld [smem:[#allocation10_spill]] }
 0x4e4   : > { %p22_p11 = scmp.ge.s32.totalorder %s25_s12, 10   ;;  %s1665_s19 = sld [smem:[#allocation11_spill]] }
 0x4e5   : > { %s1666_s27 = smov %s1316_s28  ;;  %s1667_s28 = smov %s1320_s29 }
 0x4e6   : > { %s1668_s29 = smov %s1459_s21  ;;  %s1669_s30 = smov %s1332_s10 }
 0x4e7   : > { %s1670_s9 = smov %s1336_s11  ;;  %24 = sbr.rel (!%p22_p11) target bundleno = 12 (0xc), region = 135 }
 0x4e9   : > { %s1671_s10 = smov %s1664_s17 }
 0x4ea   : > { %s1672_s11 = smov %s1665_s19 }
 0x4ec   :  { %883 = vsyncpa [#allocation5], 1 }
 0x4ed   :  { %885 = vsyncpa [#allocation5 + $0x1], 1 }
 0x4ee   :  { %886 = vsyncpa [#allocation7], 1 }
 0x4ef   :  { %888 = vsyncpa [#allocation7 + $0x1], 1 }

</bundles_post_ra>
